<compile_context>
chip_gen: v7x
topology: tpu7x:2x2x1
jax: 0.10.0
libtpu: 0.0.40
codegen_flags: <defaults>
</compile_context>

<pallas_src>
import functools

import jax
import jax.numpy as jnp
import numpy as np
from jax import lax
from jax.experimental import pallas as pl
from jax.experimental.pallas import tpu as pltpu

KSIZE = 3      # 3x3 conv, padding=1 ("same")
N_STATS = 4    # mean(x1), max(x1), mean(x2), max(x2)


def _round_up(x, m):
    return ((x + m - 1) // m) * m


def _vmem_budget():
    """Usable scoped-VMEM budget with headroom (v7x: 64 MiB physical -> ~48 MiB)."""
    try:
        info = pltpu.get_tpu_info()
        cap = int(getattr(info, "vmem_capacity_bytes", 0) or 0)
        if cap > 0:
            return (cap * 3) // 4
    except Exception:
        pass
    return 48 * 1024 * 1024


def uafm_kernel(x1_ref, x2_ref, halo_ref, w_ref, b_ref, out_ref, *, width, pre):
    # x1_ref / x2_ref / out_ref blocks: (1, C, TH*width)    (lane-dense flat rows)
    # halo_ref block: (1, 1, 8, pre) f32 — rows 0..3: stats of the image row just above
    #   the tile, right-aligned in a `pre`-wide slab (zeros elsewhere); rows 4..7: stats
    #   of the row just below, left-aligned.  All-zero outside the image == the conv's
    #   zero padding.  `pre` is a multiple of 128 so the halo DMA is unmasked.
    # w_ref: SMEM f32[36] (flattened (1,4,3,3) OIHW conv weight); b_ref: SMEM f32[1].
    C = x1_ref.shape[1]
    THW = x1_ref.shape[2]
    KK = KSIZE * KSIZE

    x1 = x1_ref[0]            # (C, THW)
    x2 = x2_ref[0]            # (C, THW)
    halo = halo_ref[0, 0]     # (8, pre) f32

    # Channel statistics of this tile, in f32 (exact for bf16 inputs, matches the
    # f32 halo stats); mean = sum * (1/C), constant-folded.
    x1s = x1.astype(jnp.float32)
    x2s = x2.astype(jnp.float32)
    inv_c = 1.0 / C
    stats = [
        jnp.sum(x1s, axis=0, keepdims=True) * inv_c,   # mean(x1)  (1, THW)
        jnp.max(x1s, axis=0, keepdims=True),           # max(x1)
        jnp.sum(x2s, axis=0, keepdims=True) * inv_c,   # mean(x2)
        jnp.max(x2s, axis=0, keepdims=True),           # max(x2)
    ]

    # Extended flat row per stats channel:
    #   [top halo slab (pre), tile rows row-major (THW), bottom halo slab (pre)]
    # The row-above values sit at ext[pre - width .. pre), the row-below values at
    # ext[pre + THW .. pre + THW + width); everything else in the slabs is zero.
    ext = [
        jnp.concatenate(
            [halo[c:c + 1, :], stats[c], halo[N_STATS + c:N_STATS + c + 1, :]],
            axis=1)
        for c in range(N_STATS)
    ]   # each (1, pre + THW + pre)

    # Column index within each flat row (masks flat shifts that would wrap across a
    # row boundary when `width` equals the true image width).
    col = lax.broadcasted_iota(jnp.int32, (1, THW), 1) % width

    # 3x3 conv (4 -> 1 channels), fully unrolled on the VPU.
    # Per (kh, kw): channel-weighted combine of the extended rows, then ONE static
    # slice (9 slices total).  Horizontal edge masks applied once per kw (2 selects).
    acc = jnp.zeros((1, THW), jnp.float32) + b_ref[0]
    for kw in range(KSIZE):
        dw = kw - 1
        tap = None
        for kh in range(KSIZE):
            comb = ext[0] * w_ref[0 * KK + kh * KSIZE + kw]
            for c in range(1, N_STATS):
                comb = comb + ext[c] * w_ref[c * KK + kh * KSIZE + kw]
            start = pre + (kh - 1) * width + dw          # static offset
            piece = comb[:, start:start + THW]
            tap = piece if tap is None else tap + piece
        if dw == -1:
            tap = jnp.where(col >= 1, tap, 0.0)
        elif dw == 1:
            tap = jnp.where(col <= width - 2, tap, 0.0)
        acc = acc + tap

    # sigmoid(acc) = 0.5 * (tanh(acc/2) + 1): one EUP transcendental, no divide.
    alpha = 0.5 * (jnp.tanh(acc * 0.5) + 1.0)            # (1, THW) f32

    # x1*a + x2*(1-a) == x2 + (x1 - x2)*a : one fewer op on the big tensors.
    out = x2 + (x1 - x2) * alpha.astype(x1.dtype)
    out_ref[...] = out[None].astype(out_ref.dtype)


def _pick_tile_rows(N, C, H, W, itemsize, vmem_budget,
                    target_bytes=4 << 20, min_steps=8):
    """Rows per spatial tile.  Must divide H, give a lane-dense flattened tile
    (TH*W % 128 == 0, or the whole image), and keep the double-buffered working set
    inside the VMEM budget.  Targets ~4 MiB of input per tile; prefers >= min_steps
    grid steps (dual-TC v7x) when that doesn't shrink tiles below ~target/4.
    Returns None if no legal candidate fits VMEM."""
    def tile_bytes(th):
        return C * th * W * itemsize

    def fits(th):   # 2 inputs + 1 output, double-buffered, + headroom
        return 8 * tile_bytes(th) <= vmem_budget

    cands = [th for th in range(1, H + 1)
             if H % th == 0 and fits(th) and (th == H or (th * W) % 128 == 0)]
    if not cands:
        return None
    within = [th for th in cands if tile_bytes(th) <= target_bytes] or [min(cands)]
    best = max(within)
    if N * (H // best) < min_steps:
        alts = [th for th in within
                if N * (H // th) >= min_steps and 4 * tile_bytes(th) >= target_bytes]
        if alts:
            best = max(alts)
    return best


def _boundary_row_stats(x1, x2, tile_rows, pre):
    """Channel stats of the single image row above / below each spatial tile
    (zeros where that row is outside the image == the conv's zero padding).
    Returns (N, T, 8, pre) f32; the "above" row is right-aligned inside the
    pre-wide slab, the "below" row is left-aligned, so the kernel's extended-row
    concatenation needs no further shifting."""
    N, C, H, W = x1.shape
    T = H // tile_rows
    t_ids = jnp.arange(T)
    top_src = jnp.maximum(t_ids * tile_rows - 1, 0)          # (T,)
    bot_src = jnp.minimum((t_ids + 1) * tile_rows, H - 1)    # (T,)

    def gather_stats(rows):
        a1 = jnp.take(x1, rows, axis=2).astype(jnp.float32)  # (N, C, T, W)
        a2 = jnp.take(x2, rows, axis=2).astype(jnp.float32)
        return jnp.stack(
            [a1.mean(axis=1), a1.max(axis=1), a2.mean(axis=1), a2.max(axis=1)],
            axis=2)                                          # (N, T, 4, W)

    top = jnp.where((t_ids > 0)[None, :, None, None], gather_stats(top_src), 0.0)
    bot = jnp.where((t_ids < T - 1)[None, :, None, None], gather_stats(bot_src), 0.0)
    top = jnp.pad(top, ((0, 0), (0, 0), (0, 0), (pre - W, 0)))   # (N, T, 4, pre)
    bot = jnp.pad(bot, ((0, 0), (0, 0), (0, 0), (0, pre - W)))   # (N, T, 4, pre)
    return jnp.concatenate([top, bot], axis=2)                   # (N, T, 8, pre)


def uafm(x1, x2, weight, bias, *, tile_rows=None, target_tile_bytes=4 << 20,
         force_lane_pad=False):
    """x1, x2: (N, C, H, W); weight: (1, 4, 3, 3) OIHW; bias: (1,)."""
    N, C, H, W = x1.shape
    itemsize = x1.dtype.itemsize
    budget = _vmem_budget()

    TH = None
    Wk = W
    xs1, xs2 = x1, x2
    if not force_lane_pad:
        if tile_rows is not None:
            TH = int(tile_rows)
            if H % TH != 0 or (TH != H and (TH * W) % 128 != 0):
                TH = H
            if 8 * C * TH * W * itemsize > budget:
                TH = None                       # too big for VMEM -> padded path
        else:
            TH = _pick_tile_rows(N, C, H, W, itemsize, budget, target_tile_bytes)
    if TH is None:
        # No lane-dense spatial split fits in VMEM: pad every row to a multiple of
        # 128 so *any* row count tiles lane-dense.  The zero columns reproduce the
        # conv's zero padding exactly; their outputs are zero and sliced off below.
        Wk = _round_up(max(W + 1, 128), 128)
        xs1 = jnp.pad(x1, ((0, 0), (0, 0), (0, 0), (0, Wk - W)))
        xs2 = jnp.pad(x2, ((0, 0), (0, 0), (0, 0), (0, Wk - W)))
        TH = _pick_tile_rows(N, C, H, Wk, itemsize, budget, target_tile_bytes) or 1

    T = H // TH
    THW = TH * Wk
    HWk = H * Wk
    pre = _round_up(Wk + 1, 128)                   # lane-dense halo slab width

    x1f = xs1.reshape(N, C, HWk)                   # lane-dense flattened layout
    x2f = xs2.reshape(N, C, HWk)
    halo = _boundary_row_stats(xs1, xs2, TH, pre)  # tiny (N, T, 8, pre) side input
    w_flat = weight.reshape(-1).astype(jnp.float32)   # (36,)
    b = bias.reshape(-1).astype(jnp.float32)          # (1,)

    main_block = pl.BlockSpec((1, C, THW), lambda n, t: (n, 0, t))
    halo_block = pl.BlockSpec((1, 1, 2 * N_STATS, pre), lambda n, t: (n, t, 0, 0))

    # 2 inputs + 1 output, double-buffered, plus in-register intermediates;
    # always capped by the per-core VMEM budget (v7x: 64 MiB physical).
    tile_bytes = C * THW * itemsize
    vmem_limit = int(min(budget, max(32 * 1024 * 1024, 12 * tile_bytes)))

    kernel = functools.partial(uafm_kernel, width=Wk, pre=pre)
    out_flat = pl.pallas_call(
        kernel,
        out_shape=jax.ShapeDtypeStruct((N, C, HWk), x1.dtype),
        grid=(N, T),
        in_specs=[
            main_block,                                          # x1
            main_block,                                          # x2
            halo_block,                                          # boundary-row stats
            pl.BlockSpec(memory_space=pltpu.MemorySpace.SMEM),   # conv weight scalars
            pl.BlockSpec(memory_space=pltpu.MemorySpace.SMEM),   # conv bias
        ],
        out_specs=main_block,
        compiler_params=pltpu.CompilerParams(
            dimension_semantics=("parallel", "parallel"),
            vmem_limit_bytes=vmem_limit,
        ),
    )(x1f, x2f, halo, w_flat, b)
    out = out_flat.reshape(N, C, H, Wk)
    if Wk != W:
        out = out[..., :W]
    return out


def uafm_reference(x1, x2, weight, bias):
    """Plain-JAX reference mirroring the PyTorch forward."""
    stats = jnp.concatenate(
        [
            jnp.mean(x1, axis=1, keepdims=True),
            jnp.max(x1, axis=1, keepdims=True),
            jnp.mean(x2, axis=1, keepdims=True),
            jnp.max(x2, axis=1, keepdims=True),
        ],
        axis=1,
    )
    conv = jax.lax.conv_general_dilated(
        stats, weight, window_strides=(1, 1), padding="SAME",
        dimension_numbers=("NCHW", "OIHW", "NCHW"))
    alpha = jax.nn.sigmoid(conv + bias.reshape(1, 1, 1, 1))
    return x1 * alpha + x2 * (1.0 - alpha)


if __name__ == "__main__":
    key = jax.random.PRNGKey(0)
    k1, k2, kw, kb = jax.random.split(key, 4)

    N, C, H, W = 2, 4, 16, 16
    x1 = jax.random.normal(k1, (N, C, H, W), dtype=jnp.float32)
    x2 = jax.random.normal(k2, (N, C, H, W), dtype=jnp.float32)

    # deterministic synthetic parameters for Conv2d(4, 1, kernel_size=3, padding=1, bias=True)
    weight = 0.3 * jax.random.normal(kw, (1, N_STATS, KSIZE, KSIZE), dtype=jnp.float32)
    bias = 0.1 * jax.random.normal(kb, (1,), dtype=jnp.float32)

    ref = uafm_reference(x1, x2, weight, bias)

    # Multi-tile path: 2 spatial tiles of 8 rows (128 lanes each) — exercises halos
    # and the horizontal edge masks.
    out_tiled = jax.block_until_ready(uafm(x1, x2, weight, bias, tile_rows=8))
    np.testing.assert_allclose(np.asarray(out_tiled), np.asarray(ref),
                               rtol=1e-4, atol=1e-5)

    # Auto-picked tiling (single lane-dense tile at this small size).
    out_auto = jax.block_until_ready(uafm(x1, x2, weight, bias))
    np.testing.assert_allclose(np.asarray(out_auto), np.asarray(ref),
                               rtol=1e-4, atol=1e-5)

    # Padded-width fallback path (used for shapes whose rows can't tile lane-dense
    # within VMEM) — forced here to verify correctness.
    out_pad = jax.block_until_ready(uafm(x1, x2, weight, bias, force_lane_pad=True))
    np.testing.assert_allclose(np.asarray(out_pad), np.asarray(ref),
                               rtol=1e-4, atol=1e-5)

    print("KERNEL_OK")
</pallas_src>

<mosaic_0001>
module attributes {stable_mosaic.version = 11 : i64} {
  func.func @uafm_kernel(%arg0: i32, %arg1: i32, %arg2: memref<1x4x128xf32, #tpu.memory_space<vmem>>, %arg3: memref<1x4x128xf32, #tpu.memory_space<vmem>>, %arg4: memref<1x1x8x128xf32, #tpu.memory_space<vmem>>, %arg5: memref<36xf32, #tpu.memory_space<smem>>, %arg6: memref<1xf32, #tpu.memory_space<smem>>, %arg7: memref<1x4x128xf32, #tpu.memory_space<vmem>>) attributes {dimension_semantics = [#tpu.dimension_semantics<parallel>, #tpu.dimension_semantics<parallel>], iteration_bounds = array<i64: 2, 2>, scalar_prefetch = 0 : i64, scratch_operands = 0 : i64, tpu.core_type = #tpu.core_type<tc>, window_params = [{transform_indices = @transform_0, window_bounds = array<i64: 1, 4, 128>}, {transform_indices = @transform_1, window_bounds = array<i64: 1, 4, 128>}, {transform_indices = @transform_2, window_bounds = array<i64: 1, 1, 8, 128>}, {transform_indices = @transform_3, window_bounds = array<i64: 36>}, {transform_indices = @transform_4, window_bounds = array<i64: 1>}, {transform_indices = @transform_5, window_bounds = array<i64: 1, 4, 128>}]} {
    %c0 = arith.constant 0 : index
    %c0_0 = arith.constant 0 : index
    %c0_1 = arith.constant 0 : index
    %0 = vector.load %arg2[%c0, %c0_0, %c0_1] : memref<1x4x128xf32, #tpu.memory_space<vmem>>, vector<1x4x128xf32>
    %1 = vector.shape_cast %0 : vector<1x4x128xf32> to vector<4x128xf32>
    %c0_2 = arith.constant 0 : index
    %c0_3 = arith.constant 0 : index
    %c0_4 = arith.constant 0 : index
    %2 = vector.load %arg3[%c0_2, %c0_3, %c0_4] : memref<1x4x128xf32, #tpu.memory_space<vmem>>, vector<1x4x128xf32>
    %3 = vector.shape_cast %2 : vector<1x4x128xf32> to vector<4x128xf32>
    %c0_5 = arith.constant 0 : index
    %c0_6 = arith.constant 0 : index
    %c0_7 = arith.constant 0 : index
    %c0_8 = arith.constant 0 : index
    %4 = vector.load %arg4[%c0_5, %c0_6, %c0_7, %c0_8] : memref<1x1x8x128xf32, #tpu.memory_space<vmem>>, vector<1x1x8x128xf32>
    %5 = vector.shape_cast %4 : vector<1x1x8x128xf32> to vector<8x128xf32>
    %cst = arith.constant dense<0.000000e+00> : vector<128xf32>
    %6 = vector.multi_reduction <add>, %1, %cst [0] : vector<4x128xf32> to vector<128xf32>
    %7 = vector.shape_cast %6 : vector<128xf32> to vector<1x128xf32>
    %cst_9 = arith.constant 2.500000e-01 : f32
    %8 = vector.broadcast %cst_9 : f32 to vector<1x128xf32>
    %9 = arith.mulf %7, %8 : vector<1x128xf32>
    %cst_10 = arith.constant dense<0xFF800000> : vector<128xf32>
    %10 = vector.multi_reduction <maximumf>, %1, %cst_10 [0] : vector<4x128xf32> to vector<128xf32>
    %11 = vector.shape_cast %10 : vector<128xf32> to vector<1x128xf32>
    %cst_11 = arith.constant dense<0.000000e+00> : vector<128xf32>
    %12 = vector.multi_reduction <add>, %3, %cst_11 [0] : vector<4x128xf32> to vector<128xf32>
    %13 = vector.shape_cast %12 : vector<128xf32> to vector<1x128xf32>
    %cst_12 = arith.constant 2.500000e-01 : f32
    %14 = vector.broadcast %cst_12 : f32 to vector<1x128xf32>
    %15 = arith.mulf %13, %14 : vector<1x128xf32>
    %cst_13 = arith.constant dense<0xFF800000> : vector<128xf32>
    %16 = vector.multi_reduction <maximumf>, %3, %cst_13 [0] : vector<4x128xf32> to vector<128xf32>
    %17 = vector.shape_cast %16 : vector<128xf32> to vector<1x128xf32>
    %18 = vector.extract_strided_slice %5 {offsets = [0, 0], sizes = [1, 128], strides = [1, 1]} : vector<8x128xf32> to vector<1x128xf32>
    %19 = vector.extract_strided_slice %5 {offsets = [4, 0], sizes = [1, 128], strides = [1, 1]} : vector<8x128xf32> to vector<1x128xf32>
    %20 = tpu.concatenate %18, %9, %19 in 1 : vector<1x128xf32>, vector<1x128xf32>, vector<1x128xf32> -> vector<1x384xf32>
    %21 = vector.extract_strided_slice %5 {offsets = [1, 0], sizes = [1, 128], strides = [1, 1]} : vector<8x128xf32> to vector<1x128xf32>
    %22 = vector.extract_strided_slice %5 {offsets = [5, 0], sizes = [1, 128], strides = [1, 1]} : vector<8x128xf32> to vector<1x128xf32>
    %23 = tpu.concatenate %21, %11, %22 in 1 : vector<1x128xf32>, vector<1x128xf32>, vector<1x128xf32> -> vector<1x384xf32>
    %24 = vector.extract_strided_slice %5 {offsets = [2, 0], sizes = [1, 128], strides = [1, 1]} : vector<8x128xf32> to vector<1x128xf32>
    %25 = vector.extract_strided_slice %5 {offsets = [6, 0], sizes = [1, 128], strides = [1, 1]} : vector<8x128xf32> to vector<1x128xf32>
    %26 = tpu.concatenate %24, %15, %25 in 1 : vector<1x128xf32>, vector<1x128xf32>, vector<1x128xf32> -> vector<1x384xf32>
    %27 = vector.extract_strided_slice %5 {offsets = [3, 0], sizes = [1, 128], strides = [1, 1]} : vector<8x128xf32> to vector<1x128xf32>
    %28 = vector.extract_strided_slice %5 {offsets = [7, 0], sizes = [1, 128], strides = [1, 1]} : vector<8x128xf32> to vector<1x128xf32>
    %29 = tpu.concatenate %27, %17, %28 in 1 : vector<1x128xf32>, vector<1x128xf32>, vector<1x128xf32> -> vector<1x384xf32>
    %30 = tpu.iota {dimensions = array<i32: 1>} : vector<1x128xi32>
    %c16_i32 = arith.constant 16 : i32
    %c0_i32 = arith.constant 0 : i32
    %31 = arith.cmpi eq, %c16_i32, %c0_i32 : i32
    %c1_i32 = arith.constant 1 : i32
    %32 = arith.select %31, %c1_i32, %c16_i32 : i32
    %33 = vector.broadcast %32 : i32 to vector<1x128xi32>
    %34 = arith.remsi %30, %33 : vector<1x128xi32>
    %c0_i32_14 = arith.constant 0 : i32
    %35 = vector.broadcast %c0_i32_14 : i32 to vector<1x128xi32>
    %36 = arith.cmpi ne, %34, %35 : vector<1x128xi32>
    %c0_i32_15 = arith.constant 0 : i32
    %37 = vector.broadcast %c0_i32_15 : i32 to vector<1x128xi32>
    %38 = arith.cmpi slt, %34, %37 : vector<1x128xi32>
    %c0_i32_16 = arith.constant 0 : i32
    %39 = arith.cmpi slt, %32, %c0_i32_16 : i32
    %40 = vector.broadcast %39 : i1 to vector<1x128xi1>
    %41 = vector.broadcast %40 : vector<1x128xi1> to vector<1x128xi1>
    %42 = arith.xori %38, %41 : vector<1x128xi1>
    %43 = arith.andi %42, %36 : vector<1x128xi1>
    %44 = vector.broadcast %32 : i32 to vector<1x128xi32>
    %45 = arith.addi %34, %44 : vector<1x128xi32>
    %46 = arith.select %43, %45, %34 : vector<1x128xi1>, vector<1x128xi32>
    %cst_17 = arith.constant 0.000000e+00 : f32
    %47 = vector.broadcast %cst_17 : f32 to vector<1x128xf32>
    %c0_18 = arith.constant 0 : index
    %48 = memref.load %arg6[%c0_18] : memref<1xf32, #tpu.memory_space<smem>>
    %49 = vector.broadcast %48 : f32 to vector<1x128xf32>
    %50 = arith.addf %47, %49 : vector<1x128xf32>
    %c0_19 = arith.constant 0 : index
    %51 = memref.load %arg5[%c0_19] : memref<36xf32, #tpu.memory_space<smem>>
    %52 = vector.broadcast %51 : f32 to vector<1x384xf32>
    %53 = arith.mulf %20, %52 : vector<1x384xf32>
    %c9 = arith.constant 9 : index
    %54 = memref.load %arg5[%c9] : memref<36xf32, #tpu.memory_space<smem>>
    %55 = vector.broadcast %54 : f32 to vector<1x384xf32>
    %56 = arith.mulf %23, %55 : vector<1x384xf32>
    %57 = arith.addf %53, %56 : vector<1x384xf32>
    %c18 = arith.constant 18 : index
    %58 = memref.load %arg5[%c18] : memref<36xf32, #tpu.memory_space<smem>>
    %59 = vector.broadcast %58 : f32 to vector<1x384xf32>
    %60 = arith.mulf %26, %59 : vector<1x384xf32>
    %61 = arith.addf %57, %60 : vector<1x384xf32>
    %c27 = arith.constant 27 : index
    %62 = memref.load %arg5[%c27] : memref<36xf32, #tpu.memory_space<smem>>
    %63 = vector.broadcast %62 : f32 to vector<1x384xf32>
    %64 = arith.mulf %29, %63 : vector<1x384xf32>
    %65 = arith.addf %61, %64 : vector<1x384xf32>
    %66 = vector.extract_strided_slice %65 {offsets = [0, 111], sizes = [1, 128], strides = [1, 1]} : vector<1x384xf32> to vector<1x128xf32>
    %c3 = arith.constant 3 : index
    %67 = memref.load %arg5[%c3] : memref<36xf32, #tpu.memory_space<smem>>
    %68 = vector.broadcast %67 : f32 to vector<1x384xf32>
    %69 = arith.mulf %20, %68 : vector<1x384xf32>
    %c12 = arith.constant 12 : index
    %70 = memref.load %arg5[%c12] : memref<36xf32, #tpu.memory_space<smem>>
    %71 = vector.broadcast %70 : f32 to vector<1x384xf32>
    %72 = arith.mulf %23, %71 : vector<1x384xf32>
    %73 = arith.addf %69, %72 : vector<1x384xf32>
    %c21 = arith.constant 21 : index
    %74 = memref.load %arg5[%c21] : memref<36xf32, #tpu.memory_space<smem>>
    %75 = vector.broadcast %74 : f32 to vector<1x384xf32>
    %76 = arith.mulf %26, %75 : vector<1x384xf32>
    %77 = arith.addf %73, %76 : vector<1x384xf32>
    %c30 = arith.constant 30 : index
    %78 = memref.load %arg5[%c30] : memref<36xf32, #tpu.memory_space<smem>>
    %79 = vector.broadcast %78 : f32 to vector<1x384xf32>
    %80 = arith.mulf %29, %79 : vector<1x384xf32>
    %81 = arith.addf %77, %80 : vector<1x384xf32>
    %82 = vector.extract_strided_slice %81 {offsets = [0, 127], sizes = [1, 128], strides = [1, 1]} : vector<1x384xf32> to vector<1x128xf32>
    %83 = arith.addf %66, %82 : vector<1x128xf32>
    %c6 = arith.constant 6 : index
    %84 = memref.load %arg5[%c6] : memref<36xf32, #tpu.memory_space<smem>>
    %85 = vector.broadcast %84 : f32 to vector<1x384xf32>
    %86 = arith.mulf %20, %85 : vector<1x384xf32>
    %c15 = arith.constant 15 : index
    %87 = memref.load %arg5[%c15] : memref<36xf32, #tpu.memory_space<smem>>
    %88 = vector.broadcast %87 : f32 to vector<1x384xf32>
    %89 = arith.mulf %23, %88 : vector<1x384xf32>
    %90 = arith.addf %86, %89 : vector<1x384xf32>
    %c24 = arith.constant 24 : index
    %91 = memref.load %arg5[%c24] : memref<36xf32, #tpu.memory_space<smem>>
    %92 = vector.broadcast %91 : f32 to vector<1x384xf32>
    %93 = arith.mulf %26, %92 : vector<1x384xf32>
    %94 = arith.addf %90, %93 : vector<1x384xf32>
    %c33 = arith.constant 33 : index
    %95 = memref.load %arg5[%c33] : memref<36xf32, #tpu.memory_space<smem>>
    %96 = vector.broadcast %95 : f32 to vector<1x384xf32>
    %97 = arith.mulf %29, %96 : vector<1x384xf32>
    %98 = arith.addf %94, %97 : vector<1x384xf32>
    %99 = vector.extract_strided_slice %98 {offsets = [0, 143], sizes = [1, 128], strides = [1, 1]} : vector<1x384xf32> to vector<1x128xf32>
    %100 = arith.addf %83, %99 : vector<1x128xf32>
    %c1_i32_20 = arith.constant 1 : i32
    %101 = vector.broadcast %c1_i32_20 : i32 to vector<1x128xi32>
    %102 = arith.cmpi sge, %46, %101 : vector<1x128xi32>
    %cst_21 = arith.constant 0.000000e+00 : f32
    %103 = vector.broadcast %cst_21 : f32 to vector<1x128xf32>
    %104 = arith.select %102, %100, %103 : vector<1x128xi1>, vector<1x128xf32>
    %105 = arith.addf %50, %104 : vector<1x128xf32>
    %c1 = arith.constant 1 : index
    %106 = memref.load %arg5[%c1] : memref<36xf32, #tpu.memory_space<smem>>
    %107 = vector.broadcast %106 : f32 to vector<1x384xf32>
    %108 = arith.mulf %20, %107 : vector<1x384xf32>
    %c10 = arith.constant 10 : index
    %109 = memref.load %arg5[%c10] : memref<36xf32, #tpu.memory_space<smem>>
    %110 = vector.broadcast %109 : f32 to vector<1x384xf32>
    %111 = arith.mulf %23, %110 : vector<1x384xf32>
    %112 = arith.addf %108, %111 : vector<1x384xf32>
    %c19 = arith.constant 19 : index
    %113 = memref.load %arg5[%c19] : memref<36xf32, #tpu.memory_space<smem>>
    %114 = vector.broadcast %113 : f32 to vector<1x384xf32>
    %115 = arith.mulf %26, %114 : vector<1x384xf32>
    %116 = arith.addf %112, %115 : vector<1x384xf32>
    %c28 = arith.constant 28 : index
    %117 = memref.load %arg5[%c28] : memref<36xf32, #tpu.memory_space<smem>>
    %118 = vector.broadcast %117 : f32 to vector<1x384xf32>
    %119 = arith.mulf %29, %118 : vector<1x384xf32>
    %120 = arith.addf %116, %119 : vector<1x384xf32>
    %121 = vector.extract_strided_slice %120 {offsets = [0, 112], sizes = [1, 128], strides = [1, 1]} : vector<1x384xf32> to vector<1x128xf32>
    %c4 = arith.constant 4 : index
    %122 = memref.load %arg5[%c4] : memref<36xf32, #tpu.memory_space<smem>>
    %123 = vector.broadcast %122 : f32 to vector<1x384xf32>
    %124 = arith.mulf %20, %123 : vector<1x384xf32>
    %c13 = arith.constant 13 : index
    %125 = memref.load %arg5[%c13] : memref<36xf32, #tpu.memory_space<smem>>
    %126 = vector.broadcast %125 : f32 to vector<1x384xf32>
    %127 = arith.mulf %23, %126 : vector<1x384xf32>
    %128 = arith.addf %124, %127 : vector<1x384xf32>
    %c22 = arith.constant 22 : index
    %129 = memref.load %arg5[%c22] : memref<36xf32, #tpu.memory_space<smem>>
    %130 = vector.broadcast %129 : f32 to vector<1x384xf32>
    %131 = arith.mulf %26, %130 : vector<1x384xf32>
    %132 = arith.addf %128, %131 : vector<1x384xf32>
    %c31 = arith.constant 31 : index
    %133 = memref.load %arg5[%c31] : memref<36xf32, #tpu.memory_space<smem>>
    %134 = vector.broadcast %133 : f32 to vector<1x384xf32>
    %135 = arith.mulf %29, %134 : vector<1x384xf32>
    %136 = arith.addf %132, %135 : vector<1x384xf32>
    %137 = vector.extract_strided_slice %136 {offsets = [0, 128], sizes = [1, 128], strides = [1, 1]} : vector<1x384xf32> to vector<1x128xf32>
    %138 = arith.addf %121, %137 : vector<1x128xf32>
    %c7 = arith.constant 7 : index
    %139 = memref.load %arg5[%c7] : memref<36xf32, #tpu.memory_space<smem>>
    %140 = vector.broadcast %139 : f32 to vector<1x384xf32>
    %141 = arith.mulf %20, %140 : vector<1x384xf32>
    %c16 = arith.constant 16 : index
    %142 = memref.load %arg5[%c16] : memref<36xf32, #tpu.memory_space<smem>>
    %143 = vector.broadcast %142 : f32 to vector<1x384xf32>
    %144 = arith.mulf %23, %143 : vector<1x384xf32>
    %145 = arith.addf %141, %144 : vector<1x384xf32>
    %c25 = arith.constant 25 : index
    %146 = memref.load %arg5[%c25] : memref<36xf32, #tpu.memory_space<smem>>
    %147 = vector.broadcast %146 : f32 to vector<1x384xf32>
    %148 = arith.mulf %26, %147 : vector<1x384xf32>
    %149 = arith.addf %145, %148 : vector<1x384xf32>
    %c34 = arith.constant 34 : index
    %150 = memref.load %arg5[%c34] : memref<36xf32, #tpu.memory_space<smem>>
    %151 = vector.broadcast %150 : f32 to vector<1x384xf32>
    %152 = arith.mulf %29, %151 : vector<1x384xf32>
    %153 = arith.addf %149, %152 : vector<1x384xf32>
    %154 = vector.extract_strided_slice %153 {offsets = [0, 144], sizes = [1, 128], strides = [1, 1]} : vector<1x384xf32> to vector<1x128xf32>
    %155 = arith.addf %138, %154 : vector<1x128xf32>
    %156 = arith.addf %105, %155 : vector<1x128xf32>
    %c2 = arith.constant 2 : index
    %157 = memref.load %arg5[%c2] : memref<36xf32, #tpu.memory_space<smem>>
    %158 = vector.broadcast %157 : f32 to vector<1x384xf32>
    %159 = arith.mulf %20, %158 : vector<1x384xf32>
    %c11 = arith.constant 11 : index
    %160 = memref.load %arg5[%c11] : memref<36xf32, #tpu.memory_space<smem>>
    %161 = vector.broadcast %160 : f32 to vector<1x384xf32>
    %162 = arith.mulf %23, %161 : vector<1x384xf32>
    %163 = arith.addf %159, %162 : vector<1x384xf32>
    %c20 = arith.constant 20 : index
    %164 = memref.load %arg5[%c20] : memref<36xf32, #tpu.memory_space<smem>>
    %165 = vector.broadcast %164 : f32 to vector<1x384xf32>
    %166 = arith.mulf %26, %165 : vector<1x384xf32>
    %167 = arith.addf %163, %166 : vector<1x384xf32>
    %c29 = arith.constant 29 : index
    %168 = memref.load %arg5[%c29] : memref<36xf32, #tpu.memory_space<smem>>
    %169 = vector.broadcast %168 : f32 to vector<1x384xf32>
    %170 = arith.mulf %29, %169 : vector<1x384xf32>
    %171 = arith.addf %167, %170 : vector<1x384xf32>
    %172 = vector.extract_strided_slice %171 {offsets = [0, 113], sizes = [1, 128], strides = [1, 1]} : vector<1x384xf32> to vector<1x128xf32>
    %c5 = arith.constant 5 : index
    %173 = memref.load %arg5[%c5] : memref<36xf32, #tpu.memory_space<smem>>
    %174 = vector.broadcast %173 : f32 to vector<1x384xf32>
    %175 = arith.mulf %20, %174 : vector<1x384xf32>
    %c14 = arith.constant 14 : index
    %176 = memref.load %arg5[%c14] : memref<36xf32, #tpu.memory_space<smem>>
    %177 = vector.broadcast %176 : f32 to vector<1x384xf32>
    %178 = arith.mulf %23, %177 : vector<1x384xf32>
    %179 = arith.addf %175, %178 : vector<1x384xf32>
    %c23 = arith.constant 23 : index
    %180 = memref.load %arg5[%c23] : memref<36xf32, #tpu.memory_space<smem>>
    %181 = vector.broadcast %180 : f32 to vector<1x384xf32>
    %182 = arith.mulf %26, %181 : vector<1x384xf32>
    %183 = arith.addf %179, %182 : vector<1x384xf32>
    %c32 = arith.constant 32 : index
    %184 = memref.load %arg5[%c32] : memref<36xf32, #tpu.memory_space<smem>>
    %185 = vector.broadcast %184 : f32 to vector<1x384xf32>
    %186 = arith.mulf %29, %185 : vector<1x384xf32>
    %187 = arith.addf %183, %186 : vector<1x384xf32>
    %188 = vector.extract_strided_slice %187 {offsets = [0, 129], sizes = [1, 128], strides = [1, 1]} : vector<1x384xf32> to vector<1x128xf32>
    %189 = arith.addf %172, %188 : vector<1x128xf32>
    %c8 = arith.constant 8 : index
    %190 = memref.load %arg5[%c8] : memref<36xf32, #tpu.memory_space<smem>>
    %191 = vector.broadcast %190 : f32 to vector<1x384xf32>
    %192 = arith.mulf %20, %191 : vector<1x384xf32>
    %c17 = arith.constant 17 : index
    %193 = memref.load %arg5[%c17] : memref<36xf32, #tpu.memory_space<smem>>
    %194 = vector.broadcast %193 : f32 to vector<1x384xf32>
    %195 = arith.mulf %23, %194 : vector<1x384xf32>
    %196 = arith.addf %192, %195 : vector<1x384xf32>
    %c26 = arith.constant 26 : index
    %197 = memref.load %arg5[%c26] : memref<36xf32, #tpu.memory_space<smem>>
    %198 = vector.broadcast %197 : f32 to vector<1x384xf32>
    %199 = arith.mulf %26, %198 : vector<1x384xf32>
    %200 = arith.addf %196, %199 : vector<1x384xf32>
    %c35 = arith.constant 35 : index
    %201 = memref.load %arg5[%c35] : memref<36xf32, #tpu.memory_space<smem>>
    %202 = vector.broadcast %201 : f32 to vector<1x384xf32>
    %203 = arith.mulf %29, %202 : vector<1x384xf32>
    %204 = arith.addf %200, %203 : vector<1x384xf32>
    %205 = vector.extract_strided_slice %204 {offsets = [0, 145], sizes = [1, 128], strides = [1, 1]} : vector<1x384xf32> to vector<1x128xf32>
    %206 = arith.addf %189, %205 : vector<1x128xf32>
    %c14_i32 = arith.constant 14 : i32
    %207 = vector.broadcast %c14_i32 : i32 to vector<1x128xi32>
    %208 = arith.cmpi sle, %46, %207 : vector<1x128xi32>
    %cst_22 = arith.constant 0.000000e+00 : f32
    %209 = vector.broadcast %cst_22 : f32 to vector<1x128xf32>
    %210 = arith.select %208, %206, %209 : vector<1x128xi1>, vector<1x128xf32>
    %211 = arith.addf %156, %210 : vector<1x128xf32>
    %cst_23 = arith.constant 5.000000e-01 : f32
    %212 = vector.broadcast %cst_23 : f32 to vector<1x128xf32>
    %213 = arith.mulf %211, %212 : vector<1x128xf32>
    %214 = math.tanh %213 : vector<1x128xf32>
    %cst_24 = arith.constant 1.000000e+00 : f32
    %215 = vector.broadcast %cst_24 : f32 to vector<1x128xf32>
    %216 = arith.addf %214, %215 : vector<1x128xf32>
    %cst_25 = arith.constant 5.000000e-01 : f32
    %217 = vector.broadcast %cst_25 : f32 to vector<1x128xf32>
    %218 = arith.mulf %217, %216 : vector<1x128xf32>
    %219 = arith.subf %1, %3 : vector<4x128xf32>
    %220 = vector.broadcast %218 : vector<1x128xf32> to vector<4x128xf32>
    %221 = arith.mulf %219, %220 : vector<4x128xf32>
    %222 = arith.addf %3, %221 : vector<4x128xf32>
    %223 = vector.shape_cast %222 : vector<4x128xf32> to vector<1x4x128xf32>
    %c0_26 = arith.constant 0 : index
    %c0_27 = arith.constant 0 : index
    %c0_28 = arith.constant 0 : index
    %224 = vector.load %arg7[%c0_26, %c0_27, %c0_28] : memref<1x4x128xf32, #tpu.memory_space<vmem>>, vector<1x4x128xf32>
    tpu.vector_store %arg7[%c0_26, %c0_27, %c0_28], %223 {strides = array<i32>} : memref<1x4x128xf32, #tpu.memory_space<vmem>>, vector<1x4x128xf32>,
    return
  }
  func.func @transform_0(%arg0: i32, %arg1: i32) -> (i32, i32, i32) {
    %c0_i32 = arith.constant 0 : i32
    %c0_i32_0 = arith.constant 0 : i32
    return %arg0, %c0_i32, %arg1 : i32, i32, i32
  }
  func.func @transform_1(%arg0: i32, %arg1: i32) -> (i32, i32, i32) {
    %c0_i32 = arith.constant 0 : i32
    %c0_i32_0 = arith.constant 0 : i32
    return %arg0, %c0_i32, %arg1 : i32, i32, i32
  }
  func.func @transform_2(%arg0: i32, %arg1: i32) -> (i32, i32, i32, i32) {
    %c0_i32 = arith.constant 0 : i32
    %c0_i32_0 = arith.constant 0 : i32
    %c0_i32_1 = arith.constant 0 : i32
    return %arg0, %arg1, %c0_i32, %c0_i32_0 : i32, i32, i32, i32
  }
  func.func @transform_3(%arg0: i32, %arg1: i32) -> i32 {
    %c0_i32 = arith.constant 0 : i32
    %c0_i32_0 = arith.constant 0 : i32
    return %c0_i32 : i32
  }
  func.func @transform_4(%arg0: i32, %arg1: i32) -> i32 {
    %c0_i32 = arith.constant 0 : i32
    %c0_i32_0 = arith.constant 0 : i32
    return %c0_i32 : i32
  }
  func.func @transform_5(%arg0: i32, %arg1: i32) -> (i32, i32, i32) {
    %c0_i32 = arith.constant 0 : i32
    %c0_i32_0 = arith.constant 0 : i32
    return %arg0, %c0_i32, %arg1 : i32, i32, i32
  }
}

</mosaic_0001>

<bundles_post_ra>
// kernel: tpu_custom_call.1
= control target key start
LH: loop header
LB: loop body
LE: loop exit
PB: predicated region body
PF: predicated region fallthrough
CT: control target
= control target key end

     0   :  { %s1991_s0 = inlined_call_operand.hbm [shape: f32[2,4,256], index: 0, kind: input, shape index: {}]   ;;  %s1992_s1 = inlined_call_operand.hbm [shape: f32[2,4,256], index: 1, kind: input, shape index: {}]   ;;  %s1993_s2 = inlined_call_operand.hbm [shape: f32[2,2,8,128], index: 2, kind: input, shape index: {}]   ;;  %s1994_s3 = inlined_call_operand.vmem [shape: f32[36], index: 3, kind: input, shape index: {}]   ;;  %s1995_s4 = inlined_call_operand.<no memory space> [shape: f32[1], index: 4, kind: input, shape index: {}]   ;;  %s1996_s5 = inlined_call_operand.hbm [shape: f32[2,4,256], index: 5, kind: output, shape index: {}]  }
   0x1   :  { %2012 = sst [smem:[#allocation23_spill]] %s1992_s1 }
   0x2   :  { %2013 = sst [smem:[#allocation24_spill]] %s1994_s3 }
   0x3   :  { %10 = sst [smem:[#allocation2]] %s1995_s4 }
   0x4   :  { %11 = vsyncpa [#allocation4], 0 }
   0x5   :  { %13 = vsyncpa [#allocation4 + $0x1], 0 }
   0x6   :  { %14 = vsyncpa [#allocation8], 0 }
   0x7   :  { %16 = vsyncpa [#allocation8 + $0x1], 0 }
   0x8   :  { %17 = vsyncpa [#allocation6], 0 }
   0x9   :  { %18 = vsyncpa [#allocation5], 0 }
   0xa   :  { %20 = vsyncpa [#allocation5 + $0x1], 0  ;;  %s1441_s20 = smov 0   ;;  %s1443_s21 = smov 0  }
   0xb   :  { %s1445_s22 = smov 0   ;;  %s1447_s23 = smov 0  }
   0xc   :  { %s1449_s24 = smov 0   ;;  %s1451_s25 = smov 0  }
   0xd   :  { %s1453_s4 = smov 0   ;;  %s1455_s26 = smov 0  }
   0xe LB: > { %2014 = sst [smem:[#allocation16_spill]] %s1376_s22  ;;  %s35_s27 = sadd.s32 1, %s1388_s25  ;;  %s1396_s26 = sphi %s1455_s26, %s26_s26   ;;  %s1392_s4 = sphi %s1453_s4, %s2047_s4   ;;  %s1388_s25 = sphi %s1451_s25, %s2046_s25   ;;  %s1384_s24 = sphi %s1449_s24, %s2045_s24   ;;  %s1380_s23 = sphi %s1447_s23, %s2044_s23   ;;  %s1376_s22 = sphi %s1445_s22, %s2043_s22   ;;  %s1372_s21 = sphi %s1443_s21, %s2049_s21   ;;  %s1368_s20 = sphi %s1441_s20, %s2048_s20  }
   0xf   : > { %2015 = sst [smem:[#allocation17_spill]] %s1388_s25  ;;  %s38_s28 = sadd.s32 1, %s1392_s4 }
  0x10   : > { %2016 = sst [smem:[#allocation18_spill]] %s1392_s4  ;;  %p36_p0 = scmp.ge.s32.totalorder %s35_s27, 2 }
  0x11   : > { %s47_s29 = sadd.s32 1, %s1376_s22  ;;  %p1998_p1 = scmp.ne.s32.totalorder %s1376_s22, %s1372_s21 }
  0x12   : > { %p55_p2 = scmp.eq.s32.totalorder %s1396_s26, 0  ;;  %s2051_s27 = smov (%p36_p0, %s35_s27), 0 }
  0x13   : > { %2017 = sst [smem:[#allocation19_spill]] %s2051_s27  ;;  %s2053_s28 = smov (!%p36_p0, %s38_s28), %s1392_s4 }
  0x14   : > { %s43_s30 = ssub.s32 %s1388_s25, %s2051_s27  ;;  %p56_p3 = por %p55_p2, %p1998_p1 }
  0x15   : > { %p40_p4 = scmp.ge.s32.totalorder %s2053_s28, 2  ;;  %p1110_p5 = scmp.lt.s32.totalorder %s1396_s26, 4 }
  0x16   : > { %s1497_s6 = sand.u32 1, %s1376_s22   ;;  %s1025_s8 = sshll.u32 %s1392_s4, 1 }
  0x17   : > { %s2055_s28 = smov (%p40_p4, %s2053_s28), 0  ;;  %s1997_s7 = sshll.u32 %s1497_s6, 2 }
  0x18   : > { %2018 = sst [smem:[#allocation20_spill]] %s2055_s28  ;;  %s42_s9 = ssub.s32 %s1392_s4, %s2055_s28 }
  0x19   : > { %s1506_s10 = sadd.s32 %s1388_s25, %s1025_s8  ;;  %s44_s11 = sor.u32 %s43_s30, %s42_s9 }
  0x1a   : > { %s1026_s12 = sshll.u32 %s1506_s10, 6  ;;  %p45_p6 = scmp.eq.s32.totalorder %s44_s11, 0 }
  0x1b   : > { %p1509_p7 = pnand %p1110_p5, %p56_p3  ;;  %s244_s14 = sand.u32 1, %s1396_s26  }
  0x1c   : > { %s1515_s15 = scalar_select %p45_p6, %s1376_s22, %s47_s29  }
  0x1d   : > { %s2019_s13 = scalar_select %p1509_p7, 1, 0 }
  0x1e   : > { %2020 = sst [smem:[#allocation21_spill]] %s1515_s15  ;;  %s2021_s1 = sld [smem:[#allocation23_spill]] }
  0x1f   : > { %s248_s19 = scalar_lea.vmem [#allocation7], %s1997_s7  ;;  %s1528_s8 = scalar_lea.sflag [#allocation8], %s244_s14 }
  0x20   : > { %s257_s30 = sshll.u32 %s248_s19, 4  ;;  %p1534_p9 = pneg %p1509_p7  ;;  %s1526_s30 = int_to_ptr.vmem [resolvable:$true] %s257_s30 }
  0x24   : > { %s1522_s18 = scalar_lea.hbm %s2021_s1, %s1026_s12  ;;  %s1190_s17 = scalar_lea.hbm %s2021_s1, 256 }
  0x25   : > { %s1185_s9 = scalar_lea.hbm %s1522_s18, 64  ;;  %p1191_p12 = scmp.lt.u32.totalorder %s1522_s18, %s2021_s1 }
  0x26   : > { %p1186_p8 = scmp.ne.s32.totalorder %s1522_s18, %s1185_s9  ;;  %p1192_p13 = scmp.lt.u32.totalorder %s1190_s17, %s1185_s9 }
  0x27   : > { %p1194_p2 = scmp.lt.u32.totalorder %s1185_s9, %s1522_s18 }
  0x28   : > { %p1188_p10 = pnand %p1534_p9, %p1186_p8  ;;  %p1193_p0 = por %p1192_p13, %p1191_p12 }
  0x2a   : > { %p1189_p11 = pneg %p1188_p10  ;;  %p1195_p3 = por %p1194_p2, %p1193_p0 }
  0x2c   : > { %p1196_p4 = pnand %p1195_p3, %p1189_p11 }
  0x2e   : > { %1199 = shalt.err (!%p1196_p4)
}
  0x2f   : > { %s1200_s14 = scalar_lea.vmem %s1526_s30, 64  ;;  %s1398_s11 = smov [#allocation7]  }
  0x30   : > { %p1201_p5 = scmp.ne.s32.totalorder %s1526_s30, %s1200_s14  ;;  %s1205_s16 = sshll.u32 %s1398_s11, 4  ;;  %s1206_s16 = int_to_ptr.vmem [resolvable:$false] %s1205_s16 }
  0x31   : > { %s1207_s7 = scalar_lea.vmem %s1206_s16, 128  ;;  %p1208_p10 = scmp.lt.s32.totalorder %s1526_s30, %s1206_s16 }
  0x32   : > { %p1203_p6 = pnand %p1201_p5, %p1534_p9  ;;  %p1209_p1 = scmp.lt.s32.totalorder %s1207_s7, %s1200_s14 }
  0x34   : > { %p1204_p8 = pneg %p1203_p6  ;;  %p1210_p12 = por %p1209_p1, %p1208_p10 }
  0x36   : > { %p1211_p13 = pnand %p1210_p12, %p1204_p8 }
  0x38   : > { %1214 = shalt.err (!%p1211_p13)
}
  0x39   : > { %1101 = dma.hbm_to_vmem [thread:$0]  (!%p1509_p7), %s1522_s18, 64, %s1526_s30, %s1528_s8  }
  0x3a   : > { %s1559_s9 = sadd.s32 4294967295, %s1396_s26   ;;  %s1020_s17 = sadd.s32 4294967294, %s1396_s26  }
  0x3b   : > { %p60_p1 = scmp.ne.s32.totalorder %s1372_s21, %s1368_s20  ;;  %p2004_p11 = scmp.eq.s32.totalorder %s1559_s9, 0 }
  0x3c   : > { %p184_p0 = scmp.eq.s32.totalorder %s1559_s9, 3  ;;  %p190_p2 = scmp.eq.s32.totalorder %s1020_s17, 3 }
  0x3d   : > { %p1021_p3 = scmp.ge.s32.totalorder %s1396_s26, 1  ;;  %p1569_p4 = por %p2004_p11, %p60_p1 }
  0x3e   : > { %p2024_p5 = scmp.ne.s32.totalorder %s1376_s22, %s1372_s21  ;;  %p1580_p8 = por %p190_p2, %p60_p1 }
  0x3f   : > { %s2023_s19 = scalar_select %p1569_p4, 1, 0 }
  0x40   : > { %p1576_p6 = por %p184_p0, %p2024_p5  ;;  %p197_p10 = scmp.lt.s32.totalorder %s1396_s26, 5 }
  0x41   : > { %s2026_s30 = scalar_select %p1580_p8, 1, 0 }
  0x42   : > { %s2025_s18 = scalar_select %p1576_p6, 1, 0 }
  0x43   : > { %2027 = sst [smem:[#allocation22_spill]] %s2026_s30  ;;  %s2028_s3 = sld [smem:[#allocation24_spill]] }
  0x44   : > { %p1588_p12 = pnand %p1021_p3, %p197_p10  ;;  %s1601_s28 = scalar_lea.hbm %s1991_s0, %s1026_s12 }
  0x45   : > { %s2030_s27 = sshll.u32 %s1497_s6, 2  ;;  %s225_s4 = scalar_lea.sflag [#allocation4], %s1497_s6 }
  0x46   : > { %s2029_s7 = scalar_select %p1588_p12, 1, 0 }
  0x47   : > { %p1091_p13 = pneg %p1588_p12  ;;  %s228_s14 = scalar_lea.vmem [#allocation3], %s2030_s27 }
  0x48   : > { %s237_s11 = sshll.u32 %s228_s14, 4  ;;  %s1215_s25 = scalar_lea.hbm %s1601_s28, 64  ;;  %s238_s11 = int_to_ptr.vmem [resolvable:$true] %s237_s11 }
  0x49   : > { %s210_s16 = sshll.u32 %s2028_s3, 4  ;;  %p1607_p1 = pnand %p1091_p13, %p2004_p11  ;;  %s1592_s16 = int_to_ptr.vmem [resolvable:$true] %s210_s16 }
  0x4a   : > { %p1216_p0 = scmp.ne.s32.totalorder %s1601_s28, %s1215_s25  ;;  %s1220_s17 = scalar_lea.hbm %s1991_s0, 256 }
  0x4b   : > { %s2031_s3 = scalar_select %p1607_p1, 1, 0 }
  0x4c   : > { %p1218_p2 = pnand %p1216_p0, %p1534_p9  ;;  %p1221_p5 = scmp.lt.u32.totalorder %s1601_s28, %s1991_s0 }
  0x4d   : > { %p1222_p10 = scmp.lt.u32.totalorder %s1220_s17, %s1215_s25  ;;  %p1224_p11 = scmp.lt.u32.totalorder %s1215_s25, %s1601_s28 }
  0x4e   : > { %p1219_p3 = pneg %p1218_p2 }
  0x4f   : > { %p1223_p13 = por %p1222_p10, %p1221_p5 }
  0x51   : > { %p1225_p8 = por %p1224_p11, %p1223_p13 }
  0x53   : > { %p1226_p6 = pnand %p1225_p8, %p1219_p3 }
  0x55   : > { %1229 = shalt.err (!%p1226_p6)
}
  0x56   : > { %s1230_s27 = scalar_lea.vmem %s238_s11, 64  ;;  %s1399_s14 = smov [#allocation3]  }
  0x57   : > { %p1231_p4 = scmp.ne.s32.totalorder %s238_s11, %s1230_s27  ;;  %s1235_s30 = sshll.u32 %s1399_s14, 4  ;;  %s1236_s30 = int_to_ptr.vmem [resolvable:$false] %s1235_s30 }
  0x58   : > { %s1237_s1 = scalar_lea.vmem %s1236_s30, 128  ;;  %p1238_p12 = scmp.lt.s32.totalorder %s238_s11, %s1236_s30 }
  0x59   : > { %p1233_p0 = pnand %p1231_p4, %p1534_p9  ;;  %p1239_p1 = scmp.lt.s32.totalorder %s1237_s1, %s1230_s27 }
  0x5b   : > { %p1234_p2 = pneg %p1233_p0  ;;  %p1240_p7 = por %p1239_p1, %p1238_p12 }
  0x5d   : > { %p1241_p5 = pnand %p1240_p7, %p1234_p2 }
  0x5f   : > { %1244 = shalt.err (!%p1241_p5)
}
  0x60   : > { %p2032_p10 = scmp.ne.s32.totalorder %s2019_s13, 0  ;;  %s1030_s22 = sshll.u32 %s1497_s6, 3 }
  0x61   : > { %s1245_s25 = scalar_lea.vmem %s1592_s16, 16  ;;  %p2033_p4 = scmp.ne.s32.totalorder %s2031_s3, 0 }
  0x62   : > { %1098 = dma.hbm_to_vmem [thread:$0]  (!%p2032_p10), %s1601_s28, 64, %s238_s11, %s225_s4  }
  0x63   : > { %p1246_p11 = scmp.ne.s32.totalorder %s1592_s16, %s1245_s25  ;;  %p1247_p6 = pneg %p2033_p4 }
  0x64   : > { %p1253_p12 = scmp.lt.s32.totalorder %s1592_s16, %s1592_s16  ;;  %p1254_p7 = scmp.lt.s32.totalorder %s1245_s25, %s1245_s25 }
  0x65   : > { %p1248_p8 = pnand %p1247_p6, %p1246_p11 }
  0x66   : > { %p1255_p1 = por %p1254_p7, %p1253_p12 }
  0x67   : > { %p1249_p3 = pneg %p1248_p8 }
  0x69   : > { %p1256_p13 = pnand %p1255_p1, %p1249_p3 }
  0x6b   : > { %1259 = shalt.err (!%p1256_p13)
}
  0x6c   : > { %s1400_s15 = smov [#allocation10]   ;;  %s1032_s4 = sshll.u32 %s1506_s10, 7 }
  0x6d   : > { %1094 = dma.vmem_to_smem (!%p2033_p4), %s1592_s16, 16, %s1400_s15, [#allocation6]  }
  0x6e   : > { %s1643_s30 = scalar_lea.hbm %s1993_s2, %s1032_s4  ;;  %s268_s11 = scalar_lea.vmem [#allocation9], %s1030_s22 }
  0x6f   : > { %s277_s12 = sshll.u32 %s268_s11, 4  ;;  %s1260_s17 = scalar_lea.hbm %s1643_s30, 128  ;;  %s278_s12 = int_to_ptr.vmem [resolvable:$true] %s277_s12 }
  0x70   : > { %p1261_p0 = scmp.ne.s32.totalorder %s1643_s30, %s1260_s17  ;;  %s1265_s10 = scalar_lea.hbm %s1993_s2, 512 }
  0x71   : > { %p1266_p11 = scmp.lt.u32.totalorder %s1643_s30, %s1993_s2  ;;  %p1267_p4 = scmp.lt.u32.totalorder %s1265_s10, %s1260_s17 }
  0x72   : > { %p1263_p2 = pnand %p1261_p0, %p1534_p9  ;;  %p1269_p8 = scmp.lt.u32.totalorder %s1260_s17, %s1643_s30 }
  0x73   : > { %p1268_p6 = por %p1267_p4, %p1266_p11 }
  0x74   : > { %p1264_p5 = pneg %p1263_p2 }
  0x75   : > { %p1270_p3 = por %p1269_p8, %p1268_p6 }
  0x77   : > { %p1271_p12 = pnand %p1270_p3, %p1264_p5 }
  0x79   : > { %1274 = shalt.err (!%p1271_p12)
}
  0x7a   : > { %s1275_s1 = scalar_lea.vmem %s278_s12, 128  ;;  %s1401_s22 = smov [#allocation9]  }
  0x7b   : > { %p1276_p7 = scmp.ne.s32.totalorder %s278_s12, %s1275_s1  ;;  %s1280_s25 = sshll.u32 %s1401_s22, 4  ;;  %s1281_s25 = int_to_ptr.vmem [resolvable:$false] %s1280_s25 }
  0x7c   : > { %s1282_s15 = scalar_lea.vmem %s1281_s25, 256  ;;  %p1283_p0 = scmp.lt.s32.totalorder %s278_s12, %s1281_s25 }
  0x7d   : > { %p1278_p1 = pnand %p1276_p7, %p1534_p9  ;;  %p1284_p2 = scmp.lt.s32.totalorder %s1282_s15, %s1275_s1 }
  0x7f   : > { %p1279_p13 = pneg %p1278_p1  ;;  %p1285_p10 = por %p1284_p2, %p1283_p0 }
  0x81   : > { %p1286_p4 = pnand %p1285_p10, %p1279_p13 }
  0x83   : > { %1289 = shalt.err (!%p1286_p4)
}
  0x84   : > { %p2034_p11 = scmp.ne.s32.totalorder %s2019_s13, 0  ;;  %p2035_p5 = scmp.ne.s32.totalorder %s2029_s7, 0 }
  0x85   : > { %s1666_s29 = sand.u32 (!%p2035_p5), 1, %s1372_s21   ;;  %p2036_p9 = scmp.ne.s32.totalorder (!%p2035_p5), %s2023_s19, 0 }
  0x86   : > { %1104 = dma.hbm_to_vmem [thread:$0]  (!%p2034_p11), %s1643_s30, 128, %s278_s12, %s1528_s8  }
  0x87   : > { %286 = sbr.rel (%p2035_p5) target bundleno = 479 (0x1df), region = 40  ;;  %s1669_s4 = sshll.u32 (!%p2035_p5), %s1666_s29, 2 }
  0x88   : > { %s289_s28 = scalar_lea.sflag (!%p2035_p5), [#allocation4], %s1666_s29  ;;  %s292_s6 = scalar_lea.vmem (!%p2035_p5), [#allocation3], %s1669_s4 }
  0x8e   : > { %1351 = dma.done.wait (%p2036_p9), %s289_s28, 64  }
  0x8f   : > { %1353 = vsyncadd (%p2036_p9), %s289_s28, 4294967232  ;;  %s297_s13 = sand.u32 1, %s1559_s9   ;;  %s301_s7 = scalar_lea.vmem [#allocation7], %s1669_s4 }
  0x90   : > { %s298_s8 = scalar_lea.sflag [#allocation8], %s297_s13 }
  0x91   : > { %1355 = dma.done.wait (%p2036_p9), %s298_s8, 192  }
  0x92   : > { %1357 = vsyncadd (%p2036_p9), %s298_s8, 4294967104  ;;  %s1036_s30 = sshll.u32 %s1666_s29, 3  ;;  %p2037_p10 = scmp.eq.s32.totalorder %s1559_s9, 0 }
  0x93   : > { %s310_s11 = scalar_lea.vmem [#allocation9], %s1036_s30 }
  0x94   : > { %1359 = dma.done.wait (%p2037_p10), [#allocation6], 16   ;;  %p2038_p6 = pmov %p2037_p10 }
  0x96   : > { %1361 = vsyncadd (%p2038_p6), [#allocation6], 4294967280 }
  0x97   : > { %319 = sfence }
  0x98   : > { %vm355_vm0 = vcmask 1043456   ;;  %s1688_s12 = sld [smem:[#allocation10 + $0x3]]  ;;  %s1690_s17 = sld [smem:[#allocation10 + $0xc]]  ;;  %v1696_v0 = vld [vmem:[%s292_s6] sm:$0xf]  ;;  %v1698_v1 = vld [vmem:[%s310_s11] sm:$0xff] }
  0x99   : > { %s1692_s3 = sld [smem:[#allocation10 + $0x15]]  ;;  %s1694_s16 = sld [smem:[#allocation10 + $0x1e]]  ;;  %v1700_v2 = vld [vmem:[%s301_s7] sm:$0xf]  ;;  %v356_v3 = vsel %vm355_vm0, %v1696_v0, 0.0  ;;  %v364_v4 = vsel %vm355_vm0, %v1696_v0, -inf }
  0x9a   : > { %v357_v5 = vrot.slane %v356_v3, 4  ;;  %v365_v6 = vrot.slane %v364_v4, 4  ;;  %v371_v7 = vsel %vm355_vm0, %v1700_v2, 0.0  ;;  %v379_v8 = vsel %vm355_vm0, %v1700_v2, -inf  ;;  %s1706_s9 = sld [smem:[#allocation10 + $0x6]]  ;;  %s1708_s19 = sld [smem:[#allocation10 + $0xf]] }
  0x9b   : > { %v372_v9 = vrot.slane %v371_v7, 4  ;;  %v380_v10 = vrot.slane %v379_v8, 4  ;;  %s1710_s10 = sld [smem:[#allocation10 + $0x18]]  ;;  %v1713_v13 = vrot.slane %v1698_v1, 4  ;;  %s1717_s27 = sld [smem:[#allocation10 + $0x21]]  ;;  %vm544_vm1 = vcmask 785408  }
  0x9c   : > { %v358_v11 = vadd.f32 %v357_v5, %v356_v3  ;;  %v366_v12 = vmax.f32 %v364_v4, %v365_v6  ;;  %s1727_s14 = sld [smem:[#allocation10 + $0x5]]  ;;  %s1729_s1 = sld [smem:[#allocation10 + $0xe]]  ;;  %vm492_vm2 = vcmask 916480   ;;  %vm557_vm3 = vcmask 138240  }
  0x9d   : > { %v373_v16 = vadd.f32 %v372_v9, %v371_v7  ;;  %v381_v17 = vmax.f32 %v379_v8, %v380_v10  ;;  %s1733_s22 = sld [smem:[#allocation10 + $0x17]]  ;;  %s1735_s25 = sld [smem:[#allocation10 + $0x20]]  ;;  %vm689_vm5 = vcmask 130048   ;;  %vm842_vm6 = vcmask 121856  }
  0x9e   : > { %v447_v14 = vstv %s1688_s12  ;;  %v451_v15 = vstv %s1690_s17  ;;  %v359_v24 = vrot.slane %v358_v11, 2  ;;  %v367_v25 = vrot.slane %v366_v12, 2  ;;  %s1742_s15 = sld [smem:[#allocation10 + $0x7]]  ;;  %s1746_s28 = sld [smem:[#allocation10 + $0x10]] }
  0x9f   : > { %v448_v18 = vmul.f32 %v447_v14, %v1698_v1  ;;  %v452_v19 = vmul.f32 %v451_v15, %v1698_v1  ;;  %v463_v20 = vstv %s1692_s3  ;;  %v475_v21 = vstv %s1694_s16  ;;  %s1754_s6 = sld [smem:[#allocation10 + $0x19]]  ;;  %s1756_s13 = sld [smem:[#allocation10 + $0x22]] }
  0xa0   : > { %v464_v22 = vmul.f32 %v463_v20, %v1698_v1  ;;  %v476_v23 = vmul.f32 %v475_v21, %v1698_v1  ;;  %v374_v27 = vrot.slane %v373_v16, 2  ;;  %v382_v28 = vrot.slane %v381_v17, 2  ;;  %s1402_s8 = smov 112   ;;  %s1403_s7 = smov 96  }
  0xa1   : > { %v456_v26 = vrot.slane %v452_v19, 1  ;;  %v499_v29 = vstv %s1706_s9  ;;  %v360_v32 = vadd.f32 %v359_v24, %v358_v11  ;;  %v368_v33 = vmax.f32 %v366_v12, %v367_v25  ;;  %s1788_s30 = sld [smem:[#allocation10 + $0x4]]  ;;  %s1790_s11 = sld [smem:[#allocation10 + $0xd]] }
  0xa2   : > { %v468_v30 = vrot.slane %v464_v22, 2  ;;  %v480_v31 = vrot.slane %v476_v23, 3  ;;  %v375_v35 = vadd.f32 %v374_v27, %v373_v16  ;;  %v383_v36 = vmax.f32 %v381_v17, %v382_v28  ;;  %s1798_s12 = sld [smem:[#allocation10 + $0x16]]  ;;  %s1800_s17 = sld [smem:[#allocation10 + $0x1f]] }
  0xa3   : > { %v460_v34 = vadd.f32 %v456_v26, %v448_v18  ;;  %v501_v37 = vmul.f32 %v499_v29, %v1713_v13  ;;  %v361_v38 = vrot.slane %v360_v32, 1  ;;  %v369_v39 = vrot.slane %v368_v33, 1  ;;  %s1803_s3 = sld [smem:[#allocation10 + $0x8]]  ;;  %s1807_s16 = sld [smem:[#allocation10 + $0x11]] }
  0xa4   : > { %v503_v40 = vstv %s1708_s19  ;;  %v515_v41 = vstv %s1710_s10  ;;  %v376_v43 = vrot.slane %v375_v35, 1  ;;  %v384_v44 = vrot.slane %v383_v36, 1  ;;  %s1809_s9 = sld [smem:[#allocation10 + $0x1a]]  ;;  %s1818_s19 = sld [smem:[#allocation10 + $0x23]] }
  0xa5   : > { %v472_v42 = vadd.f32 %v468_v30, %v460_v34  ;;  %v505_v45 = vmul.f32 %v503_v40, %v1713_v13  ;;  %v362_v46 = vadd.f32 %v361_v38, %v360_v32  ;;  %v1738_v47 = vmax.f32 %v368_v33, %v369_v39  ;;  %s1828_s10 = sld [smem:[#allocation10 + $0x2]]  ;;  %p2039_p3 = scmp.ne.s32.totalorder %s2025_s18, 0 }
  0xa6   : > { %v517_v48 = vmul.f32 %v515_v41, %v1713_v13  ;;  %v527_v49 = vstv %s1717_s27  ;;  %v377_v51 = vadd.f32 %v376_v43, %v375_v35  ;;  %v1744_v52 = vmax.f32 %v383_v36, %v384_v44  ;;  %s1834_s27 = sld [smem:[#allocation10 + $0xb]] }
  0xa7   : > { %v484_v50 = vadd.f32 %v480_v31, %v472_v42  ;;  %v509_v53 = vrot.slane %v505_v45, 1  ;;  %v1748_v54 = vmul.f32 0.25, %v362_v46  ;;  %v1751_v55 = vmul.f32 %v451_v15, %v1738_v47 }
  0xa8   : > { %v521_v56 = vrot.slane %v517_v48, 2  ;;  %v529_v57 = vmul.f32 %v527_v49, %v1713_v13  ;;  %v1759_v58 = vmul.f32 0.25, %v377_v51  ;;  %v1762_v59 = vmul.f32 %v475_v21, %v1744_v52 }
  0xa9   : > { %488 = vrot.lane.b32.xlu0 %v484_v50, %s1402_s8  ;;  %v513_v60 = vadd.f32 %v509_v53, %v501_v37  ;;  %v504_v61 = vmul.f32 %v503_v40, %v1738_v47  ;;  %v1766_v62 = vmul.f32 %v447_v14, %v1748_v54  ;;  %v500_v3 = vmul.f32 %v499_v29, %v1748_v54 }
  0xaa   : > { %v533_v63 = vrot.slane %v529_v57, 3  ;;  %v528_v4 = vmul.f32 %v527_v49, %v1744_v52  ;;  %v1771_v5 = vmul.f32 %v463_v20, %v1759_v58  ;;  %v516_v7 = vmul.f32 %v515_v41, %v1759_v58 }
  0xab   : > { %v525_v6 = vadd.f32 %v521_v56, %v513_v60  ;;  %v734_v8 = vstv %s1727_s14  ;;  %v738_v10 = vstv %s1729_s1  ;;  %v750_v11 = vstv %s1733_s22  ;;  %s1839_s14 = sld [smem:[#allocation10 + $0x14]]  ;;  %s1841_s1 = sld [smem:[#allocation10 + $0x1d]] }
  0xac   : > { %v736_v9 = vmul.f32 %v734_v8, %v1713_v13  ;;  %v762_v12 = vstv %s1735_s25  ;;  %v740_v15 = vmul.f32 %v738_v10, %v1713_v13  ;;  %v752_v16 = vmul.f32 %v750_v11, %v1713_v13  ;;  %s1853_s22 = sld [smem:[#allocation10]]  ;;  %s1855_s25 = sld [smem:[#allocation10 + $0x9]] }
  0xad   : > { %v537_v14 = vadd.f32 %v533_v63, %v525_v6  ;;  %v764_v17 = vmul.f32 %v762_v12, %v1713_v13  ;;  %v508_v18 = vrot.slane %v504_v61, 1  ;;  %v520_v19 = vrot.slane %v516_v7, 2 }
  0xae   : > { %v532_v20 = vrot.slane %v528_v4, 3  ;;  %v633_v21 = vstv %s1742_s15  ;;  %v744_v22 = vrot.slane %v740_v15, 1  ;;  %v756_v23 = vrot.slane %v752_v16, 2  ;;  %s1857_s15 = sld [smem:[#allocation10 + $0x12]] }
  0xaf   : > { %542 = vrot.lane.b32.xlu1 %v537_v14, %s1403_s7  ;;  %v768_v24 = vrot.slane %v764_v17, 3  ;;  %v635_v25 = vmul.f32 %v633_v21, %v1713_v13  ;;  %v512_v26 = vadd.f32 %v508_v18, %v500_v3  ;;  %v637_v27 = vstv %s1746_s28  ;;  %s1861_s28 = sld [smem:[#allocation10 + $0x1b]] }
  0xb0   : > { %v649_v28 = vstv %s1754_s6  ;;  %v661_v29 = vstv %s1756_s13  ;;  %v748_v30 = vadd.f32 %v744_v22, %v736_v9  ;;  %v639_v31 = vmul.f32 %v637_v27, %v1713_v13  ;;  %s1876_s6 = sld [smem:[#allocation10 + $0x1]]  ;;  %s1878_s13 = sld [smem:[#allocation10 + $0xa]] }
  0xb1   : > { %v651_v32 = vmul.f32 %v649_v28, %v1713_v13  ;;  %v663_v33 = vmul.f32 %v661_v29, %v1713_v13  ;;  %v524_v34 = vadd.f32 %v520_v19, %v512_v26  ;;  %v735_v35 = vmul.f32 %v734_v8, %v1748_v54 }
  0xb2   : > { %v739_v36 = vmul.f32 %v738_v10, %v1738_v47  ;;  %v751_v37 = vmul.f32 %v750_v11, %v1759_v58  ;;  %v760_v38 = vadd.f32 %v756_v23, %v748_v30  ;;  %v643_v39 = vrot.slane %v639_v31, 1 }
  0xb3   : > { %v655_v40 = vrot.slane %v651_v32, 2  ;;  %v667_v41 = vrot.slane %v663_v33, 3  ;;  %v536_v42 = vadd.f32 %v532_v20, %v524_v34  ;;  %v763_v45 = vmul.f32 %v762_v12, %v1744_v52 }
  0xb4   : > { %v743_v43 = vrot.slane %v739_v36, 1  ;;  %v755_v44 = vrot.slane %v751_v37, 2  ;;  %v772_v46 = vadd.f32 %v768_v24, %v760_v38  ;;  %v647_v48 = vadd.f32 %v643_v39, %v635_v25 }
  0xb5   : > { %v457_v49 = vrot.slane %v1751_v55, 1  ;;  %v469_v50 = vrot.slane %v1771_v5, 2  ;;  %540 = vrot.lane.b32.xlu1 %v536_v42, %s1403_s7  ;;  %v767_v53 = vrot.slane %v763_v45, 3  ;;  %v481_v56 = vrot.slane %v1762_v59, 3 }
  0xb6   : > { %v747_v51 = vadd.f32 %v743_v43, %v735_v35  ;;  %v634_v57 = vmul.f32 %v633_v21, %v1748_v54  ;;  %777 = vrot.lane.b32.xlu0 %v772_v46, %s1402_s8  ;;  %v659_v60 = vadd.f32 %v655_v40, %v647_v48  ;;  %v638_v61 = vmul.f32 %v637_v27, %v1738_v47 }
  0xb7   : > { %v461_v55 = vadd.f32 %v457_v49, %v1766_v62  ;;  %v650_v63 = vmul.f32 %v649_v28, %v1759_v58  ;;  %v662_v4 = vmul.f32 %v661_v29, %v1744_v52  ;;  %v603_v5 = vstv %s1788_s30  ;;  %s1887_s30 = sld [smem:[#allocation10 + $0x1c]] }
  0xb8   : > { %v759_v3 = vadd.f32 %v755_v44, %v747_v51  ;;  %v606_v59 = vstv %s1790_s11  ;;  %v671_v6 = vadd.f32 %v667_v41, %v659_v60  ;;  %v642_v8 = vrot.slane %v638_v61, 1  ;;  %s1405_s11 = smov 16  }
  0xb9   : > { %v473_v7 = vadd.f32 %v469_v50, %v461_v55  ;;  %v654_v9 = vrot.slane %v650_v63, 2  ;;  %v666_v62 = vrot.slane %v662_v4, 3  ;;  %v604_v11 = vmul.f32 %v603_v5, %v1748_v54 }
  0xba   : > { %v771_v10 = vadd.f32 %v767_v53, %v759_v3  ;;  %v607_v12 = vmul.f32 %v606_v59, %v1738_v47  ;;  %676 = vrot.lane.b32.xlu0 %v671_v6, %s1403_s7  ;;  %v646_v15 = vadd.f32 %v642_v8, %v634_v57  ;;  %v613_v16 = vstv %s1798_s12  ;;  %s1406_s12 = smov 15  }
  0xbb   : > { %v485_v14 = vadd.f32 %v481_v56, %v473_v7  ;;  %v620_v17 = vstv %s1800_s17  ;;  %v614_v19 = vmul.f32 %v613_v16, %v1759_v58  ;;  %v785_v21 = vstv %s1803_s3  ;;  %s403_s17 = sld [smem:[#allocation2]]  ;;  %s1075_s3 = sshll.u32 %s1384_s24, 1 }
  0xbc   : > { %775 = vrot.lane.b32.xlu1 %v771_v10, %s1402_s8  ;;  %v609_v18 = vrot.slane %v607_v12, 1  ;;  %v621_v20 = vmul.f32 %v620_v17, %v1744_v52  ;;  %v658_v22 = vadd.f32 %v654_v9, %v646_v15  ;;  %v786_v23 = vmul.f32 %v785_v21, %v1748_v54  ;;  %s860_s24 = scalar_lea.sflag [#allocation5], %s1666_s29 }
  0xbd   : > { %v789_v24 = vstv %s1807_s16  ;;  %v801_v25 = vstv %s1809_s9  ;;  %v616_v27 = vrot.slane %v614_v19, 2  ;;  %v813_v32 = vstv %s1818_s19  ;;  %s871_s16 = sadd.s32 %s1380_s23, %s1075_s3  ;;  %s351_s19 = scalar_lea.vmem [#allocation11], %s1669_s4 }
  0xbe   : > { %v611_v26 = vadd.f32 %v609_v18, %v604_v11  ;;  %v623_v28 = vrot.slane %v621_v20, 3  ;;  %v790_v29 = vmul.f32 %v789_v24, %v1738_v47  ;;  %490 = vrot.lane.b32.xlu0 %v485_v14, %s1402_s8  ;;  %v670_v30 = vadd.f32 %v666_v62, %v658_v22  ;;  %s1076_s9 = sshll.u32 %s871_s16, 6  ;;  %s1407_s4 = smov [#allocation11]  }
  0xbf   : > { %v802_v31 = vmul.f32 %v801_v25, %v1759_v58  ;;  %v787_v33 = vmul.f32 %v785_v21, %v1713_v13  ;;  %v814_v36 = vmul.f32 %v813_v32, %v1744_v52  ;;  %v791_v37 = vmul.f32 %v789_v24, %v1713_v13 }
  0xc0   : > { %v618_v34 = vadd.f32 %v616_v27, %v611_v26  ;;  %v794_v35 = vrot.slane %v790_v29, 1  ;;  %674 = vrot.lane.b32.xlu1 %v670_v30, %s1403_s7  ;;  %v803_v39 = vmul.f32 %v801_v25, %v1713_v13  ;;  %v815_v40 = vmul.f32 %v813_v32, %v1713_v13 }
  0xc1   : > { %v806_v38 = vrot.slane %v802_v31, 2  ;;  %v818_v43 = vrot.slane %v814_v36, 3  ;;  %v795_v44 = vrot.slane %v791_v37, 1  ;;  %v694_v46 = vstv %s1828_s10  ;;  %s875_s10 = sshll.u32 %s351_s19, 4  ;;  %s1939_s10 = int_to_ptr.vmem [resolvable:$true] %s875_s10 }
  0xc2   : > { %v625_v41 = vadd.f32 %v623_v28, %v618_v34  ;;  %v798_v42 = vadd.f32 %v794_v35, %v786_v23  ;;  %v807_v45 = vrot.slane %v803_v39, 2  ;;  %v819_v49 = vrot.slane %v815_v40, 3  ;;  %s1290_s23 = scalar_lea.vmem %s1939_s10, 64 }
  0xc3   : > { %v799_v48 = vadd.f32 %v795_v44, %v787_v33  ;;  %v698_v50 = vstv %s1834_s27  ;;  %v710_v51 = vstv %s1839_s14  ;;  %v722_v53 = vstv %s1841_s1  ;;  %s1937_s1 = scalar_lea.hbm %s1996_s5, %s1076_s9  ;;  %p1291_p8 = scmp.ne.s32.totalorder %s1939_s10, %s1290_s23 }
  0xc4   : > { %627 = vrot.lane.b32.xlu0 %v625_v41, %s1402_s8  ;;  %v810_v13 = vadd.f32 %v806_v38, %v798_v42  ;;  %v696_v60 = vmul.f32 %v694_v46, %v1748_v54  ;;  %v700_v55 = vmul.f32 %v698_v50, %v1738_v47  ;;  %v712_v61 = vmul.f32 %v710_v51, %v1759_v58  ;;  %s1885_s8 = sld [smem:[#allocation10 + $0x13]] }
  0xc5   : > { %v811_v57 = vadd.f32 %v807_v45, %v799_v48  ;;  %v724_v63 = vmul.f32 %v722_v53, %v1744_v52  ;;  %v407_v59 = vstv %s1853_s22  ;;  %v411_v8 = vstv %s1855_s25  ;;  %p1292_p12 = pnand %p1291_p8, %p2039_p3  ;;  %s1294_s22 = sshll.u32 %s1407_s4, 4  ;;  %s1295_s22 = int_to_ptr.vmem [resolvable:$false] %s1294_s22 }
  0xc6   : > { %v822_v56 = vadd.f32 %v818_v43, %v810_v13  ;;  %v704_v4 = vrot.slane %v700_v55, 1  ;;  %v716_v5 = vrot.slane %v712_v61, 2  ;;  %v423_v9 = vstv %s1857_s15  ;;  %s1296_s25 = scalar_lea.vmem %s1295_s22, 128  ;;  %p1297_p1 = scmp.lt.s32.totalorder %s1939_s10, %s1295_s22 }
  0xc7   : > { %v823_v3 = vadd.f32 %v819_v49, %v811_v57  ;;  %v728_v7 = vrot.slane %v724_v63, 3  ;;  %v413_v10 = vmul.f32 %v411_v8, %v1738_v47  ;;  %v425_v62 = vmul.f32 %v423_v9, %v1759_v58  ;;  %p1293_p7 = pneg %p1292_p12  ;;  %p1298_p13 = scmp.lt.s32.totalorder %s1296_s25, %s1290_s23 }
  0xc8   : > { %826 = vrot.lane.b32.xlu1 %v822_v56, %s1403_s7  ;;  %v708_v6 = vadd.f32 %v704_v4, %v696_v60  ;;  %v435_v12 = vstv %s1861_s28  ;;  %v409_v14 = vmul.f32 %v407_v59, %v1748_v54  ;;  %v563_v20 = vstv %s1876_s6 }
  0xc9   : > { %828 = vrot.lane.b32.xlu0 %v823_v3, %s1403_s7  ;;  %v417_v15 = vrot.slane %v413_v10, 1  ;;  %v429_v16 = vrot.slane %v425_v62, 2  ;;  %v437_v18 = vmul.f32 %v435_v12, %v1744_v52  ;;  %v567_v21 = vstv %s1878_s13  ;;  %s1404_s7 = smov 17   ;;  %p1299_p0 = por %p1298_p13, %p1297_p1 }
  0xca   : > { %v720_v11 = vadd.f32 %v716_v5, %v708_v6  ;;  %v565_v24 = vmul.f32 %v563_v20, %v1748_v54  ;;  %v569_v25 = vmul.f32 %v567_v21, %v1738_v47  ;;  %v579_v26 = vstv %s1885_s8 }
  0xcb   : > { %v421_v19 = vadd.f32 %v417_v15, %v409_v14  ;;  %v441_v22 = vrot.slane %v437_v18, 3  ;;  %v591_v27 = vstv %s1887_s30  ;;  %v581_v30 = vmul.f32 %v579_v26, %v1759_v58  ;;  %p1300_p2 = pnand %p1299_p0, %p1293_p7 }
  0xcc   : > { %v1893_v17 = vadd.f32 %v728_v7, %v720_v11  ;;  %v573_v29 = vrot.slane %v569_v25, 1  ;;  %v593_v31 = vmul.f32 %v591_v27, %v1744_v52  ;;  %v568_v39 = vmul.f32 %v567_v21, %v1698_v1 }
  0xcd   : > { %v433_v23 = vadd.f32 %v429_v16, %v421_v19  ;;  %v585_v33 = vrot.slane %v581_v30, 2  ;;  %v412_v54 = vmul.f32 %v411_v8, %v1698_v1  ;;  %v564_v47 = vmul.f32 %v563_v20, %v1698_v1 }
  0xce   : > { %v577_v32 = vadd.f32 %v573_v29, %v565_v24  ;;  %v597_v34 = vrot.slane %v593_v31, 3  ;;  %v572_v40 = vrot.slane %v568_v39, 1  ;;  %v580_v41 = vmul.f32 %v579_v26, %v1698_v1 }
  0xcf   : > { %v445_v28 = vadd.f32 %v441_v22, %v433_v23  ;;  %v408_v42 = vmul.f32 %v407_v59, %v1698_v1  ;;  %v416_v43 = vrot.slane %v412_v54, 1  ;;  %v424_v44 = vmul.f32 %v423_v9, %v1698_v1 }
  0xd0   : > { %v589_v35 = vadd.f32 %v585_v33, %v577_v32  ;;  %v699_v45 = vmul.f32 %v698_v50, %v1698_v1  ;;  %v576_v13 = vadd.f32 %v572_v40, %v564_v47  ;;  %v584_v48 = vrot.slane %v580_v41, 2 }
  0xd1   : > { %v592_v49 = vmul.f32 %v591_v27, %v1698_v1  ;;  %v420_v57 = vadd.f32 %v416_v43, %v408_v42  ;;  %v428_v60 = vrot.slane %v424_v44, 2  ;;  %v436_v55 = vmul.f32 %v435_v12, %v1698_v1 }
  0xd2   : > { %v601_v36 = vadd.f32 %v597_v34, %v589_v35  ;;  %v695_v61 = vmul.f32 %v694_v46, %v1698_v1  ;;  %v703_v3 = vrot.slane %v699_v45, 1  ;;  %v711_v4 = vmul.f32 %v710_v51, %v1698_v1 }
  0xd3   : > { %v588_v5 = vadd.f32 %v584_v48, %v576_v13  ;;  %v596_v50 = vrot.slane %v592_v49, 3  ;;  %v432_v59 = vadd.f32 %v428_v60, %v420_v57  ;;  %v440_v6 = vrot.slane %v436_v55, 3 }
  0xd4   : > { %v723_v8 = vmul.f32 %v722_v53, %v1698_v1  ;;  %v707_v62 = vadd.f32 %v703_v3, %v695_v61  ;;  %v715_v46 = vrot.slane %v711_v4, 2  ;;  %v389_v34 = vlaneseq }
  0xd5   : > { %v600_v11 = vadd.f32 %v596_v50, %v588_v5  ;;  %v444_v15 = vadd.f32 %v440_v6, %v432_v59  ;;  %v851_v61 = vsub.f32 %v1696_v0, %v1700_v2 }
  0xd6   : > { %v719_v18 = vadd.f32 %v715_v46, %v707_v62  ;;  %v727_v19 = vrot.slane %v723_v8, 3  ;;  %v390_v35 = vand.u32 127, %v389_v34  ;;  %v853_v49 = vshrl.u32 %v389_v34, 7 }
  0xd8   : > { %v731_v26 = vadd.f32 %v727_v19, %v719_v18  ;;  %v854_v57 = vsub.s32 0, %v853_v49 }
 0x11b   : > { %v489_v38 = vpop.permute.xlu0 %488 }
 0x121   : > { %v543_v37 = vpop.permute.xlu1 %542 }
 0x127   : > { %v541_v58 = vpop.permute.xlu1 %540 }
 0x128   : > { %v778_v52 = vpop.permute.xlu0 %777  ;;  %v545_v10 = vsel %vm544_vm1, %v541_v58, %v543_v37  ;;  %v395_v37 = vand.u32 15, %v390_v35 }
 0x12a   : > { %vm550_vm4 = vcmp.ge.s32.totalorder %v395_v37, 1  ;;  %vm835_vm7 = vcmp.le.s32.totalorder %v395_v37, 14 }
 0x12c   : > { %v677_v56 = vpop.permute.xlu0 %676 }
 0x12e   : > { %v776_v63 = vpop.permute.xlu1 %775 }
 0x12f   : > { %v779_v53 = vsel %vm492_vm2, %v776_v63, %v778_v52  ;;  %v782_v32 = vadd.f32 %v776_v63, %v731_v26 }
 0x130   : > { %v491_v7 = vpop.permute.xlu0 %490  ;;  %v783_v27 = vadd.f32 %v779_v53, %v1893_v17  ;;  %v404_v17 = vstv %s403_s17 }
 0x131   : > { %v497_v9 = vadd.f32 %v491_v7, %v445_v28  ;;  %v493_v51 = vsel %vm492_vm2, %v489_v38, %v491_v7 }
 0x132   : > { %v675_v14 = vpop.permute.xlu1 %674  ;;  %v496_v22 = vadd.f32 %v493_v51, %v444_v15 }
 0x133   : > { %v549_v12 = vadd.f32 %v545_v10, %v497_v9  ;;  %v678_v1 = vsel %vm544_vm1, %v675_v14, %v677_v56 }
 0x134   : > { %v548_v30 = vadd.f32 %v541_v58, %v496_v22 }
 0x135   : > { %555 = vrot.lane.b32.xlu0 %v549_v12, %s1404_s7 }
 0x136   : > { %v628_v16 = vpop.permute.xlu0 %627 }
 0x137   : > { %v630_v20 = vadd.f32 %v628_v16, %v600_v11  ;;  %v631_v21 = vadd.f32 %v628_v16, %v601_v36 }
 0x139   : > { %v681_v23 = vadd.f32 %v675_v14, %v630_v20  ;;  %v682_v24 = vadd.f32 %v678_v1, %v631_v21 }
 0x13a   : > { %v827_v25 = vpop.permute.xlu1 %826 }
 0x13b   : > { %685 = vrot.lane.b32.xlu1 %v681_v23, %s1405_s11  ;;  %687 = vrot.lane.b32.xlu0 %v682_v24, %s1405_s11  ;;  %v829_v28 = vpop.permute.xlu0 %828  ;;  %v833_v33 = vadd.f32 %v827_v25, %v782_v32 }
 0x13c   : > { %v830_v29 = vsel %vm544_vm1, %v827_v25, %v829_v28 }
 0x13d   : > { %v834_v31 = vadd.f32 %v830_v29, %v783_v27 }
 0x13f   : > { %553 = vrot.lane.b32.xlu1 %v548_v30, %s1404_s7  ;;  %840 = vrot.lane.b32.xlu0 %v834_v31, %s1406_s12 }
 0x143   : > { %838 = vrot.lane.b32.xlu1 %v833_v33, %s1406_s12 }
 0x1a7   : > { %v556_v36 = vpop.permute.xlu0 %555 }
 0x1ad   : > { %v686_v38 = vpop.permute.xlu1 %685  ;;  %v688_v39 = vpop.permute.xlu0 %687 }
 0x1ae   : > { %v690_v58 = vsel %vm689_vm5, %v686_v38, %v688_v39 }
 0x1b1   : > { %v554_v54 = vpop.permute.xlu1 %553  ;;  %v841_v52 = vpop.permute.xlu0 %840 }
 0x1b2   : > { %v558_v47 = vsel %vm557_vm3, %v554_v54, %v556_v36 }
 0x1b3   : > { %v560_v40 = vsel %vm550_vm4, %v558_v47, 0.0 }
 0x1b4   : > { %v561_v41 = vadd.f32 %v560_v40, %v404_v17 }
 0x1b5   : > { %v839_v42 = vpop.permute.xlu1 %838 }
 0x1b6   : > { %v692_v43 = vadd.f32 %v690_v58, %v561_v41  ;;  %v843_v44 = vsel %vm842_vm6, %v839_v42, %v841_v52 }
 0x1b7   : > { %v845_v45 = vsel %vm835_vm7, %v843_v44, 0.0 }
 0x1b8   : > { %v846_v13 = vadd.f32 %v845_v45, %v692_v43 }
 0x1ba   : > { %v847_v48 = vmul.f32 0.5, %v846_v13 }
 0x1bc   : > { %1183 = vtanh.f32 %v847_v48 }
 0x1c6   : > { %v1184_v56 = vpop.eup %1183 }
 0x1c7   : > { %v849_v60 = vadd.f32 1.0, %v1184_v56 }
 0x1c9   : > { %v850_v55 = vmul.f32 0.5, %v849_v60 }
 0x1cb   : > { %v855_v63 = vrot.slane %v850_v55, %v854_v57 }
 0x1cd   : > { %v856_v3 = vmul.f32 %v855_v63, %v851_v61 }
 0x1cf   : > { %v857_v4 = vadd.f32 %v856_v3, %v1700_v2 }
 0x1d1   : > { %858 = vst [vmem:[%s351_s19] sm:$0xf] %v857_v4 }
 0x1d2   : > { %1303 = shalt.err (!%p1300_p2)
}
 0x1d3   : > { %s1304_s29 = scalar_lea.hbm %s1937_s1, 64  ;;  %s1308_s6 = scalar_lea.hbm %s1996_s5, 256 }
 0x1d4   : > { %p1305_p4 = scmp.ne.s32.totalorder %s1937_s1, %s1304_s29  ;;  %p1309_p9 = scmp.lt.u32.totalorder %s1937_s1, %s1996_s5 }
 0x1d5   : > { %p1310_p10 = scmp.lt.u32.totalorder %s1308_s6, %s1304_s29  ;;  %p1312_p8 = scmp.lt.u32.totalorder %s1304_s29, %s1937_s1 }
 0x1d6   : > { %p1306_p11 = pnand %p1305_p4, %p2039_p3 }
 0x1d7   : > { %p1311_p6 = por %p1310_p10, %p1309_p9 }
 0x1d8   : > { %p1307_p5 = pneg %p1306_p11 }
 0x1d9   : > { %p1313_p12 = por %p1312_p8, %p1311_p6 }
 0x1db   : > { %p1314_p7 = pnand %p1313_p12, %p1307_p5 }
 0x1dd   : > { %1317 = shalt.err (!%p1314_p7)
}
 0x1de   : > { %1089 = dma.vmem_to_hbm [thread:$0]  (%p2039_p3), %s1939_s10, 64, %s1937_s1, %s860_s24  }
 0x1df PF: > { %s2040_s30 = sld [smem:[#allocation22_spill]]  ;;  %p1112_p1 = scmp.ge.s32.totalorder %s1396_s26, 2 }
 0x1e0   : > { %s887_s7 = sand.u32 1, %s1368_s20  }
 0x1e1   : > { %s888_s11 = scalar_lea.sflag [#allocation5], %s887_s7 }
 0x1e5   : > { %p2041_p13 = scmp.ne.s32.totalorder %s2040_s30, 0 }
 0x1e7   : > { %p1106_p0 = pnand %p1112_p1, %p2041_p13 }
 0x1e9   : > { %1363 = dma.done.wait (!%p1106_p0), %s888_s11, 64  }
 0x1ea   : > { %1365 = vsyncadd (!%p1106_p0), %s888_s11, 4294967232  ;;  %s26_s26 = sadd.s32 1, %s1396_s26   ;;  %s2042_s12 = sld [smem:[#allocation16_spill]] }
 0x1eb   : > { %p23_p2 = scmp.ge.s32.totalorder %s26_s26, 6   ;;  %s2043_s22 = sld [smem:[#allocation21_spill]] }
 0x1ec   : > { %s2044_s23 = sld [smem:[#allocation17_spill]]  ;;  %s2045_s24 = sld [smem:[#allocation18_spill]] }
 0x1ed   : > { %s2046_s25 = sld [smem:[#allocation19_spill]]  ;;  %s2047_s4 = sld [smem:[#allocation20_spill]] }
 0x1ee   : > { %s2048_s20 = smov %s1372_s21  ;;  %25 = sbr.rel (!%p23_p2) target bundleno = 14 (0xe), region = 114 }
 0x1f0   : > { %s2049_s21 = smov %s2042_s12 }
 0x1f5   :  { %893 = vsyncpa [#allocation4], 1 }
 0x1f6   :  { %895 = vsyncpa [#allocation4 + $0x1], 1 }
 0x1f7   :  { %896 = vsyncpa [#allocation8], 1 }
 0x1f8   :  { %898 = vsyncpa [#allocation8 + $0x1], 1 }
 0x1f9   :  { %899 = vsyncpa [#allocation5], 1 }
 0x1fa   :  { %901 = vsyncpa [#allocation5 + $0x1], 1 }
 0x1fb   :  { %902 = vsyncpa [#allocation6], 1 }
 0x1fc   :  { %904 = vsyncpa [#allocation6 + $0x1], 1 }

</bundles_post_ra>
